<compile_context>
chip_gen: v7x
topology: tpu7x:2x2x1
jax: 0.10.0
libtpu: 0.0.40
codegen_flags: <defaults>
</compile_context>

<pallas_src>
import random

import jax
import jax.numpy as jnp
from jax import lax
from jax.experimental import pallas as pl
from jax.experimental.pallas import tpu as pltpu

# ---- synthetic config (mirrors config.diffusion / config.train) ----
TIMESTEPS = 64
BETA_START = 1e-4
BETA_END = 0.02
NUM_NOISE_SAMPLE = 2
W1, W2, W3 = 0.4, 0.3, 0.3
L1, L2, L3, L4 = 0, 16, 40, 64

TN_MAX = 512   # max sample-rows per grid step (multiple of 16 for bf16 tiles)
ROW_CHUNK = 16  # rows processed per in-kernel chunk (bf16 sublane tile height)


def linear_beta_schedule(timesteps, beta_start, beta_end):
    return jnp.linspace(beta_start, beta_end, timesteps, dtype=jnp.float32)


# register_buffer equivalents (plain-JAX glue, computed once)
_betas = linear_beta_schedule(TIMESTEPS, BETA_START, BETA_END)
_alphas = 1.0 - _betas
_alphas_cumprod = jnp.cumprod(_alphas)
SQRT_ALPHAS_CUMPROD = jnp.sqrt(_alphas_cumprod).astype(jnp.float32)
SQRT_ONE_MINUS_ALPHAS_CUMPROD = jnp.sqrt(1.0 - _alphas_cumprod).astype(jnp.float32)


def _round_up(x, m):
    return ((x + m - 1) // m) * m


def _default_num_shards():
    """1 super-shard on single-TensorCore chips (v5e/v6e), 2 on v7x."""
    try:
        kind = jax.devices()[0].device_kind.lower()
    except Exception:
        return 1
    if ("v7" in kind) or ("7x" in kind):
        # TODO(synk): on v7x verify via xprof that the "parallel" axis actually
        # shards across both TensorCores (else switch to pltpu.CORE_PARALLEL).
        return 2
    return 1


def _make_kernel(C, HW, tn, R, nb, G):
    n_chunks = tn // R

    def kernel(w_ref,                    # (C, C) conv weight in SMEM (scalar prefetch)
               x_ref, noise_ref,         # bf16 VMEM blocks: (tn, C*HW)
               coef_ref,                 # f32 VMEM, whole (K*B_pad, 8) array resident
               out_ref):                 # (1, R, HW) f32 per-shard partial sums (resident)
        g = pl.program_id(0)
        b = pl.program_id(1)
        k = pl.program_id(2)

        @pl.when(jnp.logical_and(b == 0, k == 0))
        def _():
            out_ref[...] = jnp.zeros_like(out_ref)

        # first row of this (g, b, k) block inside the flattened coef array
        row0 = ((k * G + g) * nb + b) * tn

        def chunk(i, sq_acc):
            r0 = pl.multiple_of(i * R, R)
            cf = coef_ref[pl.ds(pl.multiple_of(row0 + r0, R), R), :]   # (R, 8) f32
            sac = cf[:, 0:1]
            soc = cf[:, 1:2]

            # pred_o starts from the folded bias[o] + (t/T) * temb[o]
            preds = [cf[:, 2 + o:3 + o] for o in range(C)]

            # c-outer / o-inner: form x_noisy_c once per input channel and feed
            # the C pred accumulators (tiny 1x1 conv stays on the VPU, off MXU).
            for c in range(C):
                x_c = x_ref[pl.ds(r0, R), c * HW:(c + 1) * HW].astype(jnp.float32)
                n_c = noise_ref[pl.ds(r0, R), c * HW:(c + 1) * HW].astype(jnp.float32)
                x_noisy_c = sac * x_c + soc * n_c          # q_sample, per channel
                for o in range(C):
                    preds[o] = preds[o] + w_ref[o, c] * x_noisy_c

            # squared error per output channel (reload noise_o from VMEM: cheap vld)
            sq = sq_acc
            for o in range(C):
                n_o = noise_ref[pl.ds(r0, R), o * HW:(o + 1) * HW].astype(jnp.float32)
                d = n_o - preds[o]
                sq = sq + d * d
            return sq

        sq_total = lax.fori_loop(0, n_chunks, chunk,
                                 jnp.zeros((R, HW), jnp.float32),
                                 unroll=True)
        out_ref[...] += sq_total[None]

    return kernel


def dp_diffusion_forward(x_start, model_params, key, tile_n=None, num_shards=None):
    """Pallas implementation of DPDiffusionTrainer.forward (returns the MSE loss)."""
    B, C, H, W = x_start.shape
    K = NUM_NOISE_SAMPLE
    HW = H * W
    CHW = C * HW
    assert HW % 128 == 0  # TODO(synk): pad HW in this wrapper for non-128-multiple spatial sizes

    # Host-side timestep-range selection.  This intentionally mirrors the
    # original module's if/elif control flow (two random.random() draws).
    # NOTE: this wrapper is not jitted, so the branch is re-drawn every call.
    if random.random() < W1:
        lo, hi = L1, L2
    elif random.random() < W1 + W2:
        lo, hi = L2, L3
    else:
        lo, hi = L3, L4

    kt, kn = jax.random.split(key)
    # k-major layout (K, B, ...): within each k-slice rows line up with the
    # un-repeated x_start, so the kernel reuses the same x block across k.
    t = jax.random.randint(kt, (K, B), lo, hi, dtype=jnp.int32)
    noise = jax.random.normal(kn, (K, B, C, H, W), dtype=jnp.float32)

    w, bias, temb = model_params  # (C,C), (C,), (C,)

    # precompute per-sample coefficients (the `extract` gathers) + folded bias/temb
    tf = t.reshape(-1)                                              # (K*B,) k-major
    sac = SQRT_ALPHAS_CUMPROD[tf]
    soc = SQRT_ONE_MINUS_ALPHAS_CUMPROD[tf]
    t_scale = tf.astype(jnp.float32) / float(TIMESTEPS)
    bt = bias[None, :] + t_scale[:, None] * temb[None, :]           # (K*B, C)
    ncoef = max(8, 2 + C)
    pad_cols = ncoef - (2 + C)
    pieces = [sac[:, None], soc[:, None], bt]
    if pad_cols:
        pieces.append(jnp.zeros((K * B, pad_cols), jnp.float32))
    coef = jnp.concatenate(pieces, axis=1)                          # (K*B, ncoef)

    # bf16 streaming of the big arrays (accumulation stays f32 in-kernel)
    xr = x_start.reshape(B, CHW).astype(jnp.bfloat16)               # (B, CHW)
    nr = noise.reshape(K * B, CHW).astype(jnp.bfloat16)             # (K*B, CHW)

    G = num_shards if num_shards is not None else _default_num_shards()
    R = ROW_CHUNK
    if tile_n is None:
        tile_n = min(TN_MAX, _round_up(B, R))
    tn = tile_n
    assert tn % R == 0, "tile_n must be a multiple of 16 (bf16 sublane tile)"

    b_pad = _round_up(B, G * tn)
    pad = b_pad - B
    if pad:
        xr = jnp.pad(xr, ((0, pad), (0, 0)))
        nr = jnp.pad(nr.reshape(K, B, CHW),
                     ((0, 0), (0, pad), (0, 0))).reshape(K * b_pad, CHW)
        coef = jnp.pad(coef.reshape(K, B, ncoef),
                       ((0, 0), (0, pad), (0, 0))).reshape(K * b_pad, ncoef)
    nb = b_pad // (G * tn)   # reduction steps (over the sample axis) per shard

    kernel = _make_kernel(C, HW, tn, R, nb, G)

    grid_spec = pltpu.PrefetchScalarGridSpec(
        num_scalar_prefetch=1,                      # conv weight -> SMEM scalars
        grid=(G, nb, K),
        in_specs=[
            # x: index ignores k -> block stays resident across the K noise samples
            pl.BlockSpec((tn, CHW), lambda g, b, k, *_: (g * nb + b, 0)),
            # noise: k-major flattened (K*B_pad, CHW)
            pl.BlockSpec((tn, CHW), lambda g, b, k, *_: ((k * G + g) * nb + b, 0)),
            # coef: whole array resident in VMEM (constant block index)
            pl.BlockSpec((K * b_pad, ncoef), lambda g, b, k, *_: (0, 0)),
        ],
        out_specs=pl.BlockSpec((1, R, HW), lambda g, b, k, *_: (g, 0, 0)),
    )

    partial = pl.pallas_call(
        kernel,
        out_shape=jax.ShapeDtypeStruct((G, R, HW), jnp.float32),
        grid_spec=grid_spec,
        compiler_params=pltpu.CompilerParams(
            dimension_semantics=("parallel", "arbitrary", "arbitrary"),
            vmem_limit_bytes=32 * 1024 * 1024),
    )(w, xr, nr, coef)

    loss = jnp.sum(partial) / float(K * B * C * HW)

    # values actually consumed by the kernel (bf16-rounded), for the reference
    x_used = jnp.broadcast_to(xr[None, :B].astype(jnp.float32),
                              (K, B, CHW)).reshape(K * B, C, H, W)
    noise_used = nr.reshape(K, b_pad, CHW)[:, :B].astype(jnp.float32) \
                   .reshape(K * B, C, H, W)
    return loss, (tf, noise_used, x_used)


def _reference_loss(x, t, noise, model_params):
    """Pure-JAX reference for verification (f32 math on the same inputs)."""
    w, bias, temb = model_params
    N, C, H, W = x.shape
    sac = SQRT_ALPHAS_CUMPROD[t].reshape(N, 1, 1, 1)
    soc = SQRT_ONE_MINUS_ALPHAS_CUMPROD[t].reshape(N, 1, 1, 1)
    x_noisy = sac * x + soc * noise
    xf = x_noisy.reshape(N, C, H * W)
    t_scale = (t.astype(jnp.float32) / TIMESTEPS).reshape(N, 1, 1)
    pred = (jnp.einsum("oc,ncl->nol", w, xf)
            + bias[None, :, None] + t_scale * temb[None, :, None])
    diff = noise.reshape(N, C, H * W) - pred
    return jnp.mean(diff * diff)


if __name__ == "__main__":
    random.seed(0)
    B, C, H, W = 2, 4, 16, 16

    key = jax.random.PRNGKey(0)
    kx, kparam, kfwd1, kx2, kfwd2 = jax.random.split(key, 5)

    # deterministic synthetic "model" parameters
    kW, kb, kte = jax.random.split(kparam, 3)
    w = 0.1 * jax.random.normal(kW, (C, C), dtype=jnp.float32)
    bias = 0.1 * jax.random.normal(kb, (C,), dtype=jnp.float32)
    temb = 0.1 * jax.random.normal(kte, (C,), dtype=jnp.float32)
    params = (w, bias, temb)

    # test 1: tiny batch (exercises zero-padding of the sample axis + x reuse across K)
    x_start = jax.random.normal(kx, (B, C, H, W), dtype=jnp.float32)
    loss1, (t1, n1, x1) = dp_diffusion_forward(x_start, params, kfwd1)
    loss1 = jax.block_until_ready(loss1)
    ref1 = _reference_loss(x1, t1, n1, params)

    # test 2: larger batch with a forced small tile (exercises multi-block
    # accumulation along the "arbitrary" axes and the multi-chunk inner loop)
    B2 = 40
    x_start2 = jax.random.normal(kx2, (B2, C, H, W), dtype=jnp.float32)
    loss2, (t2, n2, x2) = dp_diffusion_forward(x_start2, params, kfwd2, tile_n=32)
    loss2 = jax.block_until_ready(loss2)
    ref2 = _reference_loss(x2, t2, n2, params)

    assert jnp.allclose(loss1, ref1, rtol=1e-3, atol=1e-4), (loss1, ref1)
    assert jnp.allclose(loss2, ref2, rtol=1e-3, atol=1e-4), (loss2, ref2)
    assert jnp.isfinite(loss1) and jnp.isfinite(loss2)

    print("KERNEL_OK")
</pallas_src>

<mosaic_0001>
module attributes {stable_mosaic.version = 11 : i64} {
  func.func @kernel(%arg0: i32, %arg1: i32, %arg2: i32, %arg3: memref<4x4xf32, #tpu.memory_space<smem>>, %arg4: memref<16x1024xbf16, #tpu.memory_space<vmem>>, %arg5: memref<16x1024xbf16, #tpu.memory_space<vmem>>, %arg6: memref<32x8xf32, #tpu.memory_space<vmem>>, %arg7: memref<1x16x256xf32, #tpu.memory_space<vmem>>) attributes {dimension_semantics = [#tpu.dimension_semantics<parallel>, #tpu.dimension_semantics<arbitrary>, #tpu.dimension_semantics<arbitrary>], iteration_bounds = array<i64: 1, 1, 2>, scalar_prefetch = 1 : i64, scratch_operands = 0 : i64, tpu.core_type = #tpu.core_type<tc>, window_params = [{transform_indices = @transform_0, window_bounds = array<i64: 16, 1024>}, {transform_indices = @transform_1, window_bounds = array<i64: 16, 1024>}, {pipeline_mode = #tpu.pipeline_mode<synchronous>, transform_indices = @transform_2, window_bounds = array<i64: 32, 8>}, {transform_indices = @transform_3, window_bounds = array<i64: 1, 16, 256>}]} {
    %c0_i32 = arith.constant 0 : i32
    %0 = arith.cmpi eq, %arg1, %c0_i32 : i32
    %c0_i32_0 = arith.constant 0 : i32
    %1 = arith.cmpi eq, %arg2, %c0_i32_0 : i32
    %2 = arith.andi %0, %1 : i1
    %3 = arith.extui %2 : i1 to i32
    %c0_i32_1 = arith.constant 0 : i32
    %4 = arith.cmpi ne, %3, %c0_i32_1 : i32
    scf.if %4 {
      %cst_50 = arith.constant 0.000000e+00 : f32
      %163 = vector.broadcast %cst_50 : f32 to vector<1x16x256xf32>
      %c0_51 = arith.constant 0 : index
      %c0_52 = arith.constant 0 : index
      %c0_53 = arith.constant 0 : index
      %164 = vector.load %arg7[%c0_51, %c0_52, %c0_53] : memref<1x16x256xf32, #tpu.memory_space<vmem>>, vector<1x16x256xf32>
      tpu.vector_store %arg7[%c0_51, %c0_52, %c0_53], %163 {strides = array<i32>} : memref<1x16x256xf32, #tpu.memory_space<vmem>>, vector<1x16x256xf32>,
    } else {
    }
    %c1_i32 = arith.constant 1 : i32
    %5 = arith.muli %arg2, %c1_i32 : i32
    %6 = arith.addi %5, %arg0 : i32
    %c1_i32_2 = arith.constant 1 : i32
    %7 = arith.muli %6, %c1_i32_2 : i32
    %8 = arith.addi %7, %arg1 : i32
    %c16_i32 = arith.constant 16 : i32
    %9 = arith.muli %8, %c16_i32 : i32
    %cst = arith.constant 0.000000e+00 : f32
    %10 = vector.broadcast %cst : f32 to vector<16x256xf32>
    %c0_i32_3 = arith.constant 0 : i32
    %c16_i32_4 = arith.constant 16 : i32
    %11 = arith.muli %c0_i32_3, %c16_i32_4 : i32
    %12 = tpu.assume_multiple %11, 16 : i32
    %13 = arith.addi %9, %12 : i32
    %14 = tpu.assume_multiple %13, 16 : i32
    %15 = arith.index_cast %14 : i32 to index
    %c0 = arith.constant 0 : index
    %16 = vector.load %arg6[%15, %c0] : memref<32x8xf32, #tpu.memory_space<vmem>>, vector<16x8xf32>
    %17 = vector.extract_strided_slice %16 {offsets = [0, 0], sizes = [16, 1], strides = [1, 1]} : vector<16x8xf32> to vector<16x1xf32>
    %18 = vector.extract_strided_slice %16 {offsets = [0, 1], sizes = [16, 1], strides = [1, 1]} : vector<16x8xf32> to vector<16x1xf32>
    %19 = vector.extract_strided_slice %16 {offsets = [0, 2], sizes = [16, 1], strides = [1, 1]} : vector<16x8xf32> to vector<16x1xf32>
    %20 = vector.extract_strided_slice %16 {offsets = [0, 3], sizes = [16, 1], strides = [1, 1]} : vector<16x8xf32> to vector<16x1xf32>
    %21 = vector.extract_strided_slice %16 {offsets = [0, 4], sizes = [16, 1], strides = [1, 1]} : vector<16x8xf32> to vector<16x1xf32>
    %22 = vector.extract_strided_slice %16 {offsets = [0, 5], sizes = [16, 1], strides = [1, 1]} : vector<16x8xf32> to vector<16x1xf32>
    %23 = arith.index_cast %12 : i32 to index
    %c0_5 = arith.constant 0 : index
    %24 = vector.load %arg4[%23, %c0_5] : memref<16x1024xbf16, #tpu.memory_space<vmem>>, vector<16x256xbf16>
    %25 = arith.extf %24 : vector<16x256xbf16> to vector<16x256xf32>
    %26 = arith.index_cast %12 : i32 to index
    %c0_6 = arith.constant 0 : index
    %27 = vector.load %arg5[%26, %c0_6] : memref<16x1024xbf16, #tpu.memory_space<vmem>>, vector<16x256xbf16>
    %28 = arith.extf %27 : vector<16x256xbf16> to vector<16x256xf32>
    %29 = vector.broadcast %17 : vector<16x1xf32> to vector<16x256xf32>
    %30 = arith.mulf %29, %25 : vector<16x256xf32>
    %31 = vector.broadcast %18 : vector<16x1xf32> to vector<16x256xf32>
    %32 = arith.mulf %31, %28 : vector<16x256xf32>
    %33 = arith.addf %30, %32 : vector<16x256xf32>
    %c0_7 = arith.constant 0 : index
    %c0_8 = arith.constant 0 : index
    %34 = memref.load %arg3[%c0_7, %c0_8] : memref<4x4xf32, #tpu.memory_space<smem>>
    %35 = vector.broadcast %34 : f32 to vector<16x256xf32>
    %36 = arith.mulf %35, %33 : vector<16x256xf32>
    %37 = vector.broadcast %19 : vector<16x1xf32> to vector<16x256xf32>
    %38 = arith.addf %37, %36 : vector<16x256xf32>
    %c1 = arith.constant 1 : index
    %c0_9 = arith.constant 0 : index
    %39 = memref.load %arg3[%c1, %c0_9] : memref<4x4xf32, #tpu.memory_space<smem>>
    %40 = vector.broadcast %39 : f32 to vector<16x256xf32>
    %41 = arith.mulf %40, %33 : vector<16x256xf32>
    %42 = vector.broadcast %20 : vector<16x1xf32> to vector<16x256xf32>
    %43 = arith.addf %42, %41 : vector<16x256xf32>
    %c2 = arith.constant 2 : index
    %c0_10 = arith.constant 0 : index
    %44 = memref.load %arg3[%c2, %c0_10] : memref<4x4xf32, #tpu.memory_space<smem>>
    %45 = vector.broadcast %44 : f32 to vector<16x256xf32>
    %46 = arith.mulf %45, %33 : vector<16x256xf32>
    %47 = vector.broadcast %21 : vector<16x1xf32> to vector<16x256xf32>
    %48 = arith.addf %47, %46 : vector<16x256xf32>
    %c3 = arith.constant 3 : index
    %c0_11 = arith.constant 0 : index
    %49 = memref.load %arg3[%c3, %c0_11] : memref<4x4xf32, #tpu.memory_space<smem>>
    %50 = vector.broadcast %49 : f32 to vector<16x256xf32>
    %51 = arith.mulf %50, %33 : vector<16x256xf32>
    %52 = vector.broadcast %22 : vector<16x1xf32> to vector<16x256xf32>
    %53 = arith.addf %52, %51 : vector<16x256xf32>
    %54 = arith.index_cast %12 : i32 to index
    %c256 = arith.constant 256 : index
    %55 = vector.load %arg4[%54, %c256] : memref<16x1024xbf16, #tpu.memory_space<vmem>>, vector<16x256xbf16>
    %56 = arith.extf %55 : vector<16x256xbf16> to vector<16x256xf32>
    %57 = arith.index_cast %12 : i32 to index
    %c256_12 = arith.constant 256 : index
    %58 = vector.load %arg5[%57, %c256_12] : memref<16x1024xbf16, #tpu.memory_space<vmem>>, vector<16x256xbf16>
    %59 = arith.extf %58 : vector<16x256xbf16> to vector<16x256xf32>
    %60 = vector.broadcast %17 : vector<16x1xf32> to vector<16x256xf32>
    %61 = arith.mulf %60, %56 : vector<16x256xf32>
    %62 = vector.broadcast %18 : vector<16x1xf32> to vector<16x256xf32>
    %63 = arith.mulf %62, %59 : vector<16x256xf32>
    %64 = arith.addf %61, %63 : vector<16x256xf32>
    %c0_13 = arith.constant 0 : index
    %c1_14 = arith.constant 1 : index
    %65 = memref.load %arg3[%c0_13, %c1_14] : memref<4x4xf32, #tpu.memory_space<smem>>
    %66 = vector.broadcast %65 : f32 to vector<16x256xf32>
    %67 = arith.mulf %66, %64 : vector<16x256xf32>
    %68 = arith.addf %38, %67 : vector<16x256xf32>
    %c1_15 = arith.constant 1 : index
    %c1_16 = arith.constant 1 : index
    %69 = memref.load %arg3[%c1_15, %c1_16] : memref<4x4xf32, #tpu.memory_space<smem>>
    %70 = vector.broadcast %69 : f32 to vector<16x256xf32>
    %71 = arith.mulf %70, %64 : vector<16x256xf32>
    %72 = arith.addf %43, %71 : vector<16x256xf32>
    %c2_17 = arith.constant 2 : index
    %c1_18 = arith.constant 1 : index
    %73 = memref.load %arg3[%c2_17, %c1_18] : memref<4x4xf32, #tpu.memory_space<smem>>
    %74 = vector.broadcast %73 : f32 to vector<16x256xf32>
    %75 = arith.mulf %74, %64 : vector<16x256xf32>
    %76 = arith.addf %48, %75 : vector<16x256xf32>
    %c3_19 = arith.constant 3 : index
    %c1_20 = arith.constant 1 : index
    %77 = memref.load %arg3[%c3_19, %c1_20] : memref<4x4xf32, #tpu.memory_space<smem>>
    %78 = vector.broadcast %77 : f32 to vector<16x256xf32>
    %79 = arith.mulf %78, %64 : vector<16x256xf32>
    %80 = arith.addf %53, %79 : vector<16x256xf32>
    %81 = arith.index_cast %12 : i32 to index
    %c512 = arith.constant 512 : index
    %82 = vector.load %arg4[%81, %c512] : memref<16x1024xbf16, #tpu.memory_space<vmem>>, vector<16x256xbf16>
    %83 = arith.extf %82 : vector<16x256xbf16> to vector<16x256xf32>
    %84 = arith.index_cast %12 : i32 to index
    %c512_21 = arith.constant 512 : index
    %85 = vector.load %arg5[%84, %c512_21] : memref<16x1024xbf16, #tpu.memory_space<vmem>>, vector<16x256xbf16>
    %86 = arith.extf %85 : vector<16x256xbf16> to vector<16x256xf32>
    %87 = vector.broadcast %17 : vector<16x1xf32> to vector<16x256xf32>
    %88 = arith.mulf %87, %83 : vector<16x256xf32>
    %89 = vector.broadcast %18 : vector<16x1xf32> to vector<16x256xf32>
    %90 = arith.mulf %89, %86 : vector<16x256xf32>
    %91 = arith.addf %88, %90 : vector<16x256xf32>
    %c0_22 = arith.constant 0 : index
    %c2_23 = arith.constant 2 : index
    %92 = memref.load %arg3[%c0_22, %c2_23] : memref<4x4xf32, #tpu.memory_space<smem>>
    %93 = vector.broadcast %92 : f32 to vector<16x256xf32>
    %94 = arith.mulf %93, %91 : vector<16x256xf32>
    %95 = arith.addf %68, %94 : vector<16x256xf32>
    %c1_24 = arith.constant 1 : index
    %c2_25 = arith.constant 2 : index
    %96 = memref.load %arg3[%c1_24, %c2_25] : memref<4x4xf32, #tpu.memory_space<smem>>
    %97 = vector.broadcast %96 : f32 to vector<16x256xf32>
    %98 = arith.mulf %97, %91 : vector<16x256xf32>
    %99 = arith.addf %72, %98 : vector<16x256xf32>
    %c2_26 = arith.constant 2 : index
    %c2_27 = arith.constant 2 : index
    %100 = memref.load %arg3[%c2_26, %c2_27] : memref<4x4xf32, #tpu.memory_space<smem>>
    %101 = vector.broadcast %100 : f32 to vector<16x256xf32>
    %102 = arith.mulf %101, %91 : vector<16x256xf32>
    %103 = arith.addf %76, %102 : vector<16x256xf32>
    %c3_28 = arith.constant 3 : index
    %c2_29 = arith.constant 2 : index
    %104 = memref.load %arg3[%c3_28, %c2_29] : memref<4x4xf32, #tpu.memory_space<smem>>
    %105 = vector.broadcast %104 : f32 to vector<16x256xf32>
    %106 = arith.mulf %105, %91 : vector<16x256xf32>
    %107 = arith.addf %80, %106 : vector<16x256xf32>
    %108 = arith.index_cast %12 : i32 to index
    %c768 = arith.constant 768 : index
    %109 = vector.load %arg4[%108, %c768] : memref<16x1024xbf16, #tpu.memory_space<vmem>>, vector<16x256xbf16>
    %110 = arith.extf %109 : vector<16x256xbf16> to vector<16x256xf32>
    %111 = arith.index_cast %12 : i32 to index
    %c768_30 = arith.constant 768 : index
    %112 = vector.load %arg5[%111, %c768_30] : memref<16x1024xbf16, #tpu.memory_space<vmem>>, vector<16x256xbf16>
    %113 = arith.extf %112 : vector<16x256xbf16> to vector<16x256xf32>
    %114 = vector.broadcast %17 : vector<16x1xf32> to vector<16x256xf32>
    %115 = arith.mulf %114, %110 : vector<16x256xf32>
    %116 = vector.broadcast %18 : vector<16x1xf32> to vector<16x256xf32>
    %117 = arith.mulf %116, %113 : vector<16x256xf32>
    %118 = arith.addf %115, %117 : vector<16x256xf32>
    %c0_31 = arith.constant 0 : index
    %c3_32 = arith.constant 3 : index
    %119 = memref.load %arg3[%c0_31, %c3_32] : memref<4x4xf32, #tpu.memory_space<smem>>
    %120 = vector.broadcast %119 : f32 to vector<16x256xf32>
    %121 = arith.mulf %120, %118 : vector<16x256xf32>
    %122 = arith.addf %95, %121 : vector<16x256xf32>
    %c1_33 = arith.constant 1 : index
    %c3_34 = arith.constant 3 : index
    %123 = memref.load %arg3[%c1_33, %c3_34] : memref<4x4xf32, #tpu.memory_space<smem>>
    %124 = vector.broadcast %123 : f32 to vector<16x256xf32>
    %125 = arith.mulf %124, %118 : vector<16x256xf32>
    %126 = arith.addf %99, %125 : vector<16x256xf32>
    %c2_35 = arith.constant 2 : index
    %c3_36 = arith.constant 3 : index
    %127 = memref.load %arg3[%c2_35, %c3_36] : memref<4x4xf32, #tpu.memory_space<smem>>
    %128 = vector.broadcast %127 : f32 to vector<16x256xf32>
    %129 = arith.mulf %128, %118 : vector<16x256xf32>
    %130 = arith.addf %103, %129 : vector<16x256xf32>
    %c3_37 = arith.constant 3 : index
    %c3_38 = arith.constant 3 : index
    %131 = memref.load %arg3[%c3_37, %c3_38] : memref<4x4xf32, #tpu.memory_space<smem>>
    %132 = vector.broadcast %131 : f32 to vector<16x256xf32>
    %133 = arith.mulf %132, %118 : vector<16x256xf32>
    %134 = arith.addf %107, %133 : vector<16x256xf32>
    %135 = arith.index_cast %12 : i32 to index
    %c0_39 = arith.constant 0 : index
    %136 = vector.load %arg5[%135, %c0_39] : memref<16x1024xbf16, #tpu.memory_space<vmem>>, vector<16x256xbf16>
    %137 = arith.extf %136 : vector<16x256xbf16> to vector<16x256xf32>
    %138 = arith.subf %137, %122 : vector<16x256xf32>
    %139 = arith.mulf %138, %138 : vector<16x256xf32>
    %140 = arith.addf %10, %139 : vector<16x256xf32>
    %141 = arith.index_cast %12 : i32 to index
    %c256_40 = arith.constant 256 : index
    %142 = vector.load %arg5[%141, %c256_40] : memref<16x1024xbf16, #tpu.memory_space<vmem>>, vector<16x256xbf16>
    %143 = arith.extf %142 : vector<16x256xbf16> to vector<16x256xf32>
    %144 = arith.subf %143, %126 : vector<16x256xf32>
    %145 = arith.mulf %144, %144 : vector<16x256xf32>
    %146 = arith.addf %140, %145 : vector<16x256xf32>
    %147 = arith.index_cast %12 : i32 to index
    %c512_41 = arith.constant 512 : index
    %148 = vector.load %arg5[%147, %c512_41] : memref<16x1024xbf16, #tpu.memory_space<vmem>>, vector<16x256xbf16>
    %149 = arith.extf %148 : vector<16x256xbf16> to vector<16x256xf32>
    %150 = arith.subf %149, %130 : vector<16x256xf32>
    %151 = arith.mulf %150, %150 : vector<16x256xf32>
    %152 = arith.addf %146, %151 : vector<16x256xf32>
    %153 = arith.index_cast %12 : i32 to index
    %c768_42 = arith.constant 768 : index
    %154 = vector.load %arg5[%153, %c768_42] : memref<16x1024xbf16, #tpu.memory_space<vmem>>, vector<16x256xbf16>
    %155 = arith.extf %154 : vector<16x256xbf16> to vector<16x256xf32>
    %156 = arith.subf %155, %134 : vector<16x256xf32>
    %157 = arith.mulf %156, %156 : vector<16x256xf32>
    %158 = arith.addf %152, %157 : vector<16x256xf32>
    %c1_i32_43 = arith.constant 1 : i32
    %c0_44 = arith.constant 0 : index
    %c0_45 = arith.constant 0 : index
    %c0_46 = arith.constant 0 : index
    %159 = vector.load %arg7[%c0_44, %c0_45, %c0_46] : memref<1x16x256xf32, #tpu.memory_space<vmem>>, vector<1x16x256xf32>
    %160 = vector.shape_cast %158 : vector<16x256xf32> to vector<1x16x256xf32>
    %161 = arith.addf %159, %160 : vector<1x16x256xf32>
    %c0_47 = arith.constant 0 : index
    %c0_48 = arith.constant 0 : index
    %c0_49 = arith.constant 0 : index
    %162 = vector.load %arg7[%c0_47, %c0_48, %c0_49] : memref<1x16x256xf32, #tpu.memory_space<vmem>>, vector<1x16x256xf32>
    tpu.vector_store %arg7[%c0_47, %c0_48, %c0_49], %161 {strides = array<i32>} : memref<1x16x256xf32, #tpu.memory_space<vmem>>, vector<1x16x256xf32>,
    return
  }
  func.func @transform_0(%arg0: i32, %arg1: i32, %arg2: i32, %arg3: memref<4x4xf32, #tpu.memory_space<smem>>) -> (i32, i32) {
    %c1_i32 = arith.constant 1 : i32
    %0 = arith.muli %arg0, %c1_i32 : i32
    %1 = arith.addi %0, %arg1 : i32
    %c0_i32 = arith.constant 0 : i32
    %c0_i32_0 = arith.constant 0 : i32
    return %1, %c0_i32 : i32, i32
  }
  func.func @transform_1(%arg0: i32, %arg1: i32, %arg2: i32, %arg3: memref<4x4xf32, #tpu.memory_space<smem>>) -> (i32, i32) {
    %c1_i32 = arith.constant 1 : i32
    %0 = arith.muli %arg2, %c1_i32 : i32
    %1 = arith.addi %0, %arg0 : i32
    %c1_i32_0 = arith.constant 1 : i32
    %2 = arith.muli %1, %c1_i32_0 : i32
    %3 = arith.addi %2, %arg1 : i32
    %c0_i32 = arith.constant 0 : i32
    %c0_i32_1 = arith.constant 0 : i32
    return %3, %c0_i32 : i32, i32
  }
  func.func @transform_2(%arg0: i32, %arg1: i32, %arg2: i32, %arg3: memref<4x4xf32, #tpu.memory_space<smem>>) -> (i32, i32) {
    %c0_i32 = arith.constant 0 : i32
    %c0_i32_0 = arith.constant 0 : i32
    %c0_i32_1 = arith.constant 0 : i32
    return %c0_i32, %c0_i32_0 : i32, i32
  }
  func.func @transform_3(%arg0: i32, %arg1: i32, %arg2: i32, %arg3: memref<4x4xf32, #tpu.memory_space<smem>>) -> (i32, i32, i32) {
    %c0_i32 = arith.constant 0 : i32
    %c0_i32_0 = arith.constant 0 : i32
    %c0_i32_1 = arith.constant 0 : i32
    return %arg0, %c0_i32, %c0_i32_0 : i32, i32, i32
  }
}

</mosaic_0001>

<bundles_post_ra>
// kernel: tpu_custom_call.1
= control target key start
LH: loop header
LB: loop body
LE: loop exit
PB: predicated region body
PF: predicated region fallthrough
CT: control target
= control target key end

     0   :  { %s1672_s0 = inlined_call_operand.vmem [shape: f32[4,4], index: 0, kind: input, shape index: {}]   ;;  %s1673_s1 = inlined_call_operand.hbm [shape: bf16[16,1024], index: 1, kind: input, shape index: {}]   ;;  %s1674_s2 = inlined_call_operand.hbm [shape: bf16[32,1024], index: 2, kind: input, shape index: {}]   ;;  %s1675_s3 = inlined_call_operand.vmem [shape: f32[32,8], index: 3, kind: input, shape index: {}]   ;;  %s1676_s4 = inlined_call_operand.hbm [shape: f32[1,16,256], index: 4, kind: output, shape index: {}]  }
   0x1   :  { %s9_s17 = sshll.u32 %s1672_s0, 4  ;;  %s10_s17 = int_to_ptr.vmem [resolvable:$true] %s9_s17 }
   0x2   :  { %s861_s18 = scalar_lea.vmem %s10_s17, 64  ;;  %p866_p1 = scmp.lt.s32.totalorder %s10_s17, %s10_s17 }
   0x3   :  { %p862_p0 = scmp.ne.s32.totalorder %s10_s17, %s861_s18  ;;  %p867_p2 = scmp.lt.s32.totalorder %s861_s18, %s861_s18 }
   0x5   :  { %p868_p3 = por %p867_p2, %p866_p1 }
   0x7   :  { %p869_p4 = pnand %p868_p3, %p862_p0 }
   0x9   :  { %872 = shalt.err (!%p869_p4)  }
   0xa   :  { %s1019_s19 = smov [#allocation3]  }
   0xb   :  { %12 = dma.vmem_to_smem %s10_s17, 64, %s1019_s19, [#allocation2] }
   0xc   :  { %981 = dma.done.wait [#allocation2], 64 }
   0xd   :  { %982 = vsyncadd [#allocation2], 4294967232 }
   0xe   :  { %14 = sfence }
   0xf   :  { %15 = vsyncpa [#allocation5], 0 }
  0x10   :  { %16 = vsyncpa [#allocation8], 0 }
  0x11   :  { %18 = vsyncpa [#allocation8 + $0x1], 0 }
  0x12   :  { %19 = vsyncpa [#allocation6], 0  ;;  %s1062_s20 = smov 0   ;;  %s1064_s0 = smov 0  }
  0x13   :  { %s1066_s21 = smov 0   ;;  %s1068_s22 = smov 0  }
  0x14   :  { %s1070_s23 = smov 0   ;;  %s1072_s24 = smov 0  }
  0x15 LB: > { %s732_s25 = sadd.s32 4294967295, %s1017_s24   ;;  %p96_p5 = scmp.ne.s32.totalorder %s1001_s0, %s997_s20  ;;  %s1017_s24 = sphi %s1072_s24, %s25_s24   ;;  %s1013_s23 = sphi %s1070_s23, %s1723_s23   ;;  %s1009_s22 = sphi %s1068_s22, %s1722_s22   ;;  %s1005_s21 = sphi %s1066_s21, %s1721_s21   ;;  %s1001_s0 = sphi %s1064_s0, %s1720_s0   ;;  %s997_s20 = sphi %s1062_s20, %s1719_s20  }
  0x16   : > { %p1094_p6 = scmp.eq.s32.totalorder %s732_s25, 0  ;;  %p733_p7 = scmp.ge.s32.totalorder %s1017_s24, 1 }
  0x17   : > { %p154_p8 = scmp.lt.s32.totalorder %s1017_s24, 3  ;;  %s1020_s29 = smov [#allocation4]  }
  0x18   : > { %s1692_s26 = scalar_select %p1094_p6, 1, 0 }
  0x19   : > { %p1102_p9 = por %p1094_p6, %p96_p5  ;;  %p1106_p10 = pnand %p733_p7, %p154_p8 }
  0x1a   : > { %s171_s30 = sshll.u32 %s1020_s29, 4  ;;  %s37_s6 = sadd.s32 1, %s1013_s23  ;;  %s172_s30 = int_to_ptr.vmem [resolvable:$true] %s171_s30 }
  0x1b   : > { %s1693_s27 = scalar_select %p1102_p9, 1, 0 }
  0x1c   : > { %s1694_s28 = scalar_select %p1106_p10, 1, 0 }
  0x1d   : > { %p777_p11 = pneg %p1106_p10  ;;  %s873_s9 = scalar_lea.hbm %s1673_s1, 1024 }
  0x1e   : > { %p874_p13 = scmp.ne.s32.totalorder %s1673_s1, %s873_s9  ;;  %p880_p3 = scmp.lt.u32.totalorder %s873_s9, %s1673_s1 }
  0x1f   : > { %p1114_p12 = pnand %p777_p11, %p1094_p6 }
  0x21   : > { %p875_p0 = pneg %p1114_p12 }
  0x23   : > { %p876_p1 = pnand %p875_p0, %p874_p13 }
  0x25   : > { %p877_p2 = pneg %p876_p1 }
  0x27   : > { %p882_p4 = pnand %p880_p3, %p877_p2 }
  0x29   : > { %885 = shalt.err (!%p882_p4)
}
  0x2a   : > { %s886_s14 = scalar_lea.vmem %s172_s30, 1024  ;;  %p894_p11 = scmp.lt.s32.totalorder %s172_s30, %s172_s30 }
  0x2b   : > { %p887_p5 = scmp.ne.s32.totalorder %s172_s30, %s886_s14  ;;  %p895_p9 = scmp.lt.s32.totalorder %s886_s14, %s886_s14 }
  0x2d   : > { %p889_p7 = pnand %p887_p5, %p875_p0  ;;  %p896_p6 = por %p895_p9, %p894_p11 }
  0x2f   : > { %p890_p8 = pneg %p889_p7 }
  0x31   : > { %p897_p10 = pnand %p896_p6, %p890_p8 }
  0x33   : > { %900 = shalt.err (!%p897_p10)
}
  0x34   : > { %s1021_s15 = smov 512   ;;  %s1022_s16 = smov 32  }
  0x35   : > { %780 = dma.hbm_to_vmem [thread:$0]  (!%p1114_p12), %s1673_s1, 1024, %s172_s30, [#allocation5], %s1021_s15, %s1021_s15, %s1022_s16  }
  0x36   : > { %p38_p6 = scmp.ge.s32.totalorder %s37_s6, 2  ;;  %s83_s19 = sadd.s32 1, %s1005_s21 }
  0x37   : > { %p90_p9 = scmp.ne.s32.totalorder %s1005_s21, %s1001_s0  ;;  %p91_p10 = scmp.eq.s32.totalorder %s1017_s24, 0 }
  0x38   : > { %s1725_s6 = smov (%p38_p6, %s37_s6), 0  ;;  %p786_p0 = scmp.lt.s32.totalorder %s1017_s24, 2 }
  0x39   : > { %p92_p13 = por %p91_p10, %p90_p9  ;;  %s80_s20 = ssub.s32 %s1013_s23, %s1725_s6 }
  0x3a   : > { %s188_s29 = sand.u32 1, %s1005_s21   ;;  %p81_p1 = scmp.eq.s32.totalorder %s80_s20, 0 }
  0x3b   : > { %s736_s5 = sshll.u32 %s188_s29, 6  ;;  %s765_s7 = sshll.u32 %s1013_s23, 10 }
  0x3c   : > { %s1150_s8 = scalar_select %p81_p1, %s1005_s21, %s83_s19  }
  0x3d   : > { %s1155_s30 = scalar_lea.hbm %s1674_s2, %s765_s7  ;;  %s192_s11 = scalar_lea.vmem [#allocation7], %s736_s5 }
  0x3e   : > { %s202_s12 = sshll.u32 %s192_s11, 4  ;;  %p1157_p12 = pnand %p786_p0, %p92_p13  ;;  %s1161_s12 = int_to_ptr.vmem [resolvable:$true] %s202_s12 }
  0x3f   : > { %s1163_s14 = scalar_lea.sflag [#allocation8], %s188_s29  ;;  %s901_s17 = scalar_lea.hbm %s1155_s30, 1024 }
  0x40   : > { %p902_p2 = scmp.ne.s32.totalorder %s1155_s30, %s901_s17  ;;  %p903_p3 = pneg %p1157_p12 }
  0x41   : > { %s906_s20 = scalar_lea.hbm %s1674_s2, 2048  ;;  %p907_p7 = scmp.lt.u32.totalorder %s1155_s30, %s1674_s2 }
  0x42   : > { %p904_p4 = pnand %p903_p3, %p902_p2  ;;  %p908_p8 = scmp.lt.u32.totalorder %s906_s20, %s901_s17 }
  0x43   : > { %p910_p6 = scmp.lt.u32.totalorder %s901_s17, %s1155_s30 }
  0x44   : > { %p905_p5 = pneg %p904_p4  ;;  %p909_p11 = por %p908_p8, %p907_p7 }
  0x46   : > { %p911_p9 = por %p910_p6, %p909_p11 }
  0x48   : > { %p912_p10 = pnand %p911_p9, %p905_p5 }
  0x4a   : > { %915 = shalt.err (!%p912_p10)
}
  0x4b   : > { %s916_s29 = scalar_lea.vmem %s1161_s12, 1024  ;;  %s1023_s9 = smov [#allocation7]  }
  0x4c   : > { %p917_p13 = scmp.ne.s32.totalorder %s1161_s12, %s916_s29  ;;  %s921_s10 = sshll.u32 %s1023_s9, 4  ;;  %s922_s10 = int_to_ptr.vmem [resolvable:$false] %s921_s10 }
  0x4d   : > { %s923_s11 = scalar_lea.vmem %s922_s10, 2048  ;;  %p924_p2 = scmp.lt.s32.totalorder %s1161_s12, %s922_s10 }
  0x4e   : > { %p919_p0 = pnand %p917_p13, %p903_p3  ;;  %p925_p4 = scmp.lt.s32.totalorder %s923_s11, %s916_s29 }
  0x50   : > { %p920_p1 = pneg %p919_p0  ;;  %p926_p7 = por %p925_p4, %p924_p2 }
  0x52   : > { %p927_p8 = pnand %p926_p7, %p920_p1 }
  0x54   : > { %930 = shalt.err (!%p927_p8)
}
  0x55   : > { %784 = dma.hbm_to_vmem [thread:$0]  (!%p1157_p12), %s1155_s30, 1024, %s1161_s12, %s1163_s14, %s1021_s15, %s1021_s15, %s1022_s16  }
  0x56   : > { %p1697_p3 = scmp.ne.s32.totalorder %s1694_s28, 0 }
  0x57   : > { %p1698_p5 = scmp.ne.s32.totalorder (!%p1697_p3), %s1692_s26, 0 }
  0x58   : > { %214 = sbr.rel (%p1697_p3) target bundleno = 324 (0x144), region = 32 }
  0x5f   : > { %984 = dma.done.wait (%p1698_p5), [#allocation5], 1024  }
  0x60   : > { %986 = vsyncadd (%p1698_p5), [#allocation5], 4294966272  ;;  %s220_s17 = sand.u32 1, %s1001_s0   ;;  %p1699_p11 = scmp.ne.s32.totalorder %s1693_s27, 0 }
  0x61   : > { %s742_s13 = sshll.u32 %s220_s17, 6  ;;  %s221_s18 = scalar_lea.sflag [#allocation8], %s220_s17 }
  0x62   : > { %s1201_s19 = scalar_lea.vmem [#allocation7], %s742_s13 }
  0x63   : > { %988 = dma.done.wait (%p1699_p11), %s221_s18, 1024  }
  0x64   : > { %990 = vsyncadd (%p1699_p11), %s221_s18, 4294966272  ;;  %p248_p12 = scmp.eq.s32.totalorder %s1009_s22, 0 }
  0x65   : > { %v1024_v0 = vmov (%p248_p12), 0.0  }
  0x66   : > { %252 = sbr.rel (!%p248_p12) target bundleno = 109 (0x6d), region = 44  ;;  %253 = vst [vmem:[#allocation9] sm:$0xff] (%p248_p12), %v1024_v0  ;;  %254 = vst [vmem:[#allocation9 + $0x8] sm:$0xff] (%p248_p12), %v1024_v0 }
  0x67   : > { %255 = vst [vmem:[#allocation9 + $0x10] sm:$0xff] (%p248_p12), %v1024_v0  ;;  %256 = vst [vmem:[#allocation9 + $0x18] sm:$0xff] (%p248_p12), %v1024_v0 }
  0x6d PF: > { %s744_s26 = sshll.u32 %s1009_s22, 4  ;;  %v1025_v1 = vmov 1   ;;  %v1026_v2 = vmov 0   ;;  %v1027_v5 = vmov 2   ;;  %v1028_v6 = vmov 3   ;;  %s1212_s22 = sld [smem:[#allocation3]] }
  0x6e   : > { %853 = vset.pattern.permute.xlu1 %v1025_v1  ;;  %852 = vset.pattern.permute.xlu0 %v1026_v2  ;;  %s261_s27 = scalar_lea.vmem %s1675_s3, %s744_s26  ;;  %v1029_v7 = vmov 4   ;;  %v1030_v8 = vmov 5   ;;  %s1214_s16 = sld [smem:[#allocation3 + $0x1]]  ;;  %v1220_v9 = vld [vmem:[#allocation4] sm:$0xff]  ;;  %v1230_v13 = vld [vmem:[#allocation4 + $0x28] sm:$0xff]  ;;  %v1239_v15 = vld [vmem:[#allocation4 + $0x30] sm:$0xff] }
  0x6f   : > { %v262_v3 = vld [vmem:[%s261_s27] sm:$0xff]  ;;  %v263_v4 = vld [vmem:[%s261_s27 + $0x8] sm:$0xff]  ;;  %s1216_s30 = sld [smem:[#allocation3 + $0x2]]  ;;  %s1218_s12 = sld [smem:[#allocation3 + $0x3]]  ;;  %v1242_v16 = vld [vmem:[%s1201_s19 + $0x30] sm:$0xff]  ;;  %v269_v17 = vunpack.c.l.bf16 %v1220_v9  ;;  %v270_v18 = vunpack.c.h.bf16 %v1220_v9  ;;  %v387_v26 = vunpack.c.l.bf16 %v1230_v13  ;;  %v388_v27 = vunpack.c.h.bf16 %v1230_v13 }
  0x70   : > { %296 = vperm.xlu1 %853, %v262_v3   ;;  %283 = vperm.xlu0 %852, %v262_v3   ;;  %v1223_v10 = vld [vmem:[%s1201_s19] sm:$0xff]  ;;  %v1233_v14 = vld [vmem:[%s1201_s19 + $0x28] sm:$0xff]  ;;  %s1235_s14 = sld [smem:[#allocation3 + $0x80]]  ;;  %s1237_s20 = sld [smem:[#allocation3 + $0x81]]  ;;  %v1256_v25 = vld [vmem:[#allocation4 + $0x38] sm:$0xff]  ;;  %v451_v32 = vunpack.c.l.bf16 %v1239_v15  ;;  %v452_v33 = vunpack.c.h.bf16 %v1239_v15  ;;  %v1686_v34 = vunpack.c.l.bf16 %v1242_v16  ;;  %v1687_v38 = vunpack.c.h.bf16 %v1242_v16 }
  0x71   : > { %v1225_v11 = vld [vmem:[#allocation4 + $0x20] sm:$0xff]  ;;  %v1681_v19 = vunpack.c.l.bf16 %v1223_v10  ;;  %v1682_v20 = vunpack.c.h.bf16 %v1223_v10  ;;  %s1248_s5 = sld [smem:[#allocation3 + $0x82]]  ;;  %s1250_s7 = sld [smem:[#allocation3 + $0x83]]  ;;  %v1691_v28 = vunpack.c.l.bf16 %v1233_v14  ;;  %v1690_v29 = vunpack.c.h.bf16 %v1233_v14  ;;  %v1267_v30 = vld [vmem:[%s1201_s19 + $0x38] sm:$0xff]  ;;  %v383_v35 = vld [vmem:[#allocation4 + $0x8] sm:$0xff] }
  0x72   : > { %v1228_v12 = vld [vmem:[%s1201_s19 + $0x20] sm:$0xff]  ;;  %v271_v21 = vunpack.c.l.bf16 %v1225_v11  ;;  %v272_v22 = vunpack.c.h.bf16 %v1225_v11  ;;  %s1258_s29 = sld [smem:[#allocation3 + $0x100]]  ;;  %s1260_s9 = sld [smem:[#allocation3 + $0x101]]  ;;  %v1280_v36 = vld [vmem:[%s1201_s19 + $0x8] sm:$0xff]  ;;  %v447_v41 = vld [vmem:[#allocation4 + $0x10] sm:$0xff]  ;;  %v516_v43 = vunpack.c.h.bf16 %v1256_v25  ;;  %v1688_v44 = vunpack.c.l.bf16 %v1267_v30 }
  0x73   : > { %v279_v23 = vunpack.c.l.bf16 %v1228_v12  ;;  %v280_v24 = vunpack.c.h.bf16 %v1228_v12  ;;  %s1269_s10 = sld [smem:[#allocation3 + $0x102]]  ;;  %s1271_s11 = sld [smem:[#allocation3 + $0x103]]  ;;  %v1274_v31 = vstv %s1212_s22  ;;  %v1291_v42 = vld [vmem:[%s1201_s19 + $0x10] sm:$0xff]  ;;  %v1689_v45 = vunpack.c.h.bf16 %v1267_v30  ;;  %v1299_v47 = vld [vmem:[#allocation4 + $0x18] sm:$0xff] }
  0x74   : > { %300 = vperm.xlu1 %853, %v263_v4   ;;  %288 = vperm.xlu0 %852, %v263_v4   ;;  %v1283_v37 = vstv %s1214_s16  ;;  %v1302_v48 = vld [vmem:[%s1201_s19 + $0x18] sm:$0xff]  ;;  %v385_v49 = vunpack.c.l.bf16 %v383_v35  ;;  %v386_v50 = vunpack.c.h.bf16 %v383_v35  ;;  %v1683_v51 = vunpack.c.l.bf16 %v1280_v36  ;;  %s1434_s17 = sld [smem:[#allocation3 + $0x180]]  ;;  %s1436_s13 = sld [smem:[#allocation3 + $0x181]] }
  0x75   : > { %v1287_v39 = vstv %s1216_s30  ;;  %v1297_v46 = vstv %s1218_s12  ;;  %v392_v52 = vunpack.c.h.bf16 %v1280_v36  ;;  %v449_v53 = vunpack.c.l.bf16 %v447_v41  ;;  %s1450_s18 = sld [smem:[#allocation3 + $0x182]]  ;;  %s1452_s19 = sld [smem:[#allocation3 + $0x183]] }
  0x76   : > { %v450_v54 = vunpack.c.h.bf16 %v447_v41  ;;  %v1685_v55 = vunpack.c.l.bf16 %v1291_v42  ;;  %v1684_v56 = vunpack.c.h.bf16 %v1291_v42  ;;  %v1313_v61 = vstv %s1235_s14  ;;  %s1031_s26 = smov [#allocation9]   ;;  %p1628_p6 = scmp.eq.s32.totalorder %s732_s25, 1 }
  0x77   : > { %v1316_v62 = vstv %s1237_s20  ;;  %v1319_v63 = vstv %s1248_s5  ;;  %v1322_v0 = vstv %s1250_s7  ;;  %s644_s28 = sshll.u32 %s1031_s26, 4  ;;  %s645_s28 = int_to_ptr.vmem [resolvable:$true] %s644_s28 }
  0x78   : > { %855 = vset.pattern.permute.xlu1 %v1027_v5  ;;  %854 = vset.pattern.permute.xlu0 %v1027_v5  ;;  %s931_s27 = scalar_lea.vmem %s645_s28, 512  ;;  %p938_p0 = scmp.lt.s32.totalorder %s645_s28, %s645_s28 }
  0x79   : > { %322 = vperm.xlu1 %855, %v263_v4   ;;  %318 = vperm.xlu0 %854, %v262_v3   ;;  %v1335_v5 = vstv %s1269_s10  ;;  %p932_p9 = scmp.ne.s32.totalorder %s645_s28, %s931_s27  ;;  %p939_p1 = scmp.lt.s32.totalorder %s931_s27, %s931_s27 }
  0x7b   : > { %p933_p10 = pnand %p932_p9, %p1628_p6  ;;  %p940_p2 = por %p939_p1, %p938_p0 }
  0x7d   : > { %856 = vset.pattern.permute.xlu1 %v1028_v6  ;;  %857 = vset.pattern.permute.xlu0 %v1028_v6  ;;  %v1338_v6 = vstv %s1271_s11  ;;  %p934_p13 = pneg %p933_p10 }
  0x7e   : > { %336 = vperm.xlu1 %856, %v262_v3   ;;  %340 = vperm.xlu0 %857, %v263_v4  }
  0x7f   : > { %p941_p4 = pnand %p940_p2, %p934_p13 }
  0x82   : > { %858 = vset.pattern.permute.xlu1 %v1029_v7  ;;  %859 = vset.pattern.permute.xlu0 %v1030_v8 }
  0x83   : > { %354 = vperm.xlu1 %858, %v262_v3   ;;  %372 = vperm.xlu0 %859, %v262_v3   ;;  %v1329_v3 = vstv %s1258_s29 }
  0x87   : > { %358 = vperm.xlu1 %858, %v263_v4  }
  0x8b   : > { %860 = vset.pattern.permute.xlu1 %v1030_v8 }
  0x8c   : > { %376 = vperm.xlu1 %860, %v263_v4   ;;  %v1332_v4 = vstv %s1260_s9 }
  0xef   : > { %v1324_v1 = vpop.permute.xlu1 %296  ;;  %v1326_v2 = vpop.permute.xlu0 %283 }
  0xf0   : > { %v291_v7 = vmul.f32 %v1326_v2, %v269_v17  ;;  %v292_v8 = vmul.f32 %v1326_v2, %v270_v18  ;;  %v303_v9 = vmul.f32 %v1324_v1, %v1681_v19  ;;  %v304_v35 = vmul.f32 %v1324_v1, %v1682_v20 }
  0xf1   : > { %v395_v41 = vmul.f32 %v385_v49, %v1326_v2  ;;  %v396_v60 = vmul.f32 %v386_v50, %v1326_v2  ;;  %v399_v59 = vmul.f32 %v1683_v51, %v1324_v1  ;;  %v400_v17 = vmul.f32 %v392_v52, %v1324_v1 }
  0xf2   : > { %v1356_v18 = vadd.f32 %v303_v9, %v291_v7  ;;  %v1358_v58 = vadd.f32 %v304_v35, %v292_v8  ;;  %v459_v19 = vmul.f32 %v449_v53, %v1326_v2  ;;  %v460_v20 = vmul.f32 %v450_v54, %v1326_v2 }
  0xf3   : > { %v301_v57 = vpop.permute.xlu1 %300  ;;  %v289_v49 = vpop.permute.xlu0 %288  ;;  %v1362_v40 = vadd.f32 %v399_v59, %v395_v41  ;;  %v1364_v50 = vadd.f32 %v400_v17, %v396_v60  ;;  %v463_v51 = vmul.f32 %v1685_v55, %v1324_v1  ;;  %v464_v7 = vmul.f32 %v1684_v56, %v1324_v1 }
  0xf4   : > { %v305_v8 = vmul.f32 %v301_v57, %v279_v23  ;;  %v306_v53 = vmul.f32 %v301_v57, %v280_v24  ;;  %v401_v54 = vmul.f32 %v1691_v28, %v301_v57  ;;  %v402_v59 = vmul.f32 %v1690_v29, %v301_v57 }
  0xf5   : > { %v465_v60 = vmul.f32 %v1686_v34, %v301_v57  ;;  %v466_v9 = vmul.f32 %v1687_v38, %v301_v57  ;;  %v529_v35 = vmul.f32 %v1688_v44, %v301_v57  ;;  %v530_v41 = vmul.f32 %v1689_v45, %v301_v57 }
  0xf6   : > { %v293_v17 = vmul.f32 %v289_v49, %v271_v21  ;;  %v294_v56 = vmul.f32 %v289_v49, %v272_v22  ;;  %v397_v55 = vmul.f32 %v387_v26, %v289_v49  ;;  %v398_v34 = vmul.f32 %v388_v27, %v289_v49 }
  0xf7   : > { %v461_v38 = vmul.f32 %v451_v32, %v289_v49  ;;  %v462_v44 = vmul.f32 %v452_v33, %v289_v49  ;;  %v1700_v57 = vunpack.c.l.bf16 %v1256_v25  ;;  %v526_v29 = vmul.f32 %v516_v43, %v289_v49 }
  0xf8   : > { %v1402_v21 = vadd.f32 %v305_v8, %v293_v17  ;;  %v1404_v11 = vadd.f32 %v306_v53, %v294_v56  ;;  %v1406_v22 = vadd.f32 %v401_v54, %v397_v55  ;;  %v1408_v26 = vadd.f32 %v402_v59, %v398_v34  ;;  %v323_v13 = vpop.permute.xlu1 %322 }
  0xf9   : > { %v525_v45 = vmul.f32 %v1700_v57, %v289_v49  ;;  %v1410_v27 = vadd.f32 %v465_v60, %v461_v38  ;;  %v1412_v28 = vadd.f32 %v466_v9, %v462_v44  ;;  %v1416_v15 = vadd.f32 %v530_v41, %v526_v29  ;;  %v319_v9 = vpop.permute.xlu0 %318 }
  0xfa   : > { %v315_v25 = vmul.f32 %v1274_v31, %v1402_v21  ;;  %v316_v33 = vmul.f32 %v1274_v31, %v1404_v11  ;;  %v411_v43 = vmul.f32 %v1283_v37, %v1406_v22  ;;  %v412_v34 = vmul.f32 %v1283_v37, %v1408_v26 }
  0xfb   : > { %v1414_v32 = vadd.f32 %v529_v35, %v525_v45  ;;  %v475_v38 = vmul.f32 %v1287_v39, %v1410_v27  ;;  %v476_v44 = vmul.f32 %v1287_v39, %v1412_v28  ;;  %v540_v45 = vmul.f32 %v1297_v46, %v1416_v15 }
  0xfc   : > { %v327_v55 = vadd.f32 %v323_v13, %v315_v25  ;;  %v328_v56 = vadd.f32 %v323_v13, %v316_v33  ;;  %v313_v49 = vmul.f32 %v1274_v31, %v1356_v18  ;;  %v314_v8 = vmul.f32 %v1274_v31, %v1358_v58 }
  0xfd   : > { %v539_v29 = vmul.f32 %v1297_v46, %v1414_v32  ;;  %v409_v53 = vmul.f32 %v1283_v37, %v1362_v40  ;;  %v410_v54 = vmul.f32 %v1283_v37, %v1364_v50  ;;  %v1446_v59 = vadd.f32 %v463_v51, %v459_v19 }
  0xfe   : > { %v1448_v60 = vadd.f32 %v464_v7, %v460_v20  ;;  %v415_v35 = vadd.f32 %v411_v43, %v327_v55  ;;  %v416_v41 = vadd.f32 %v412_v34, %v328_v56  ;;  %v1701_v31 = vunpack.c.l.bf16 %v1299_v47  ;;  %v337_v34 = vpop.permute.xlu1 %336 }
  0xff   : > { %v1702_v57 = vunpack.c.h.bf16 %v1299_v47  ;;  %v473_v19 = vmul.f32 %v1287_v39, %v1446_v59  ;;  %v1703_v37 = vunpack.c.l.bf16 %v1302_v48  ;;  %v1704_v7 = vunpack.c.h.bf16 %v1302_v48 }
 0x100   : > { %v523_v17 = vmul.f32 %v1701_v31, %v1326_v2  ;;  %v474_v20 = vmul.f32 %v1287_v39, %v1448_v60  ;;  %v479_v33 = vadd.f32 %v475_v38, %v415_v35  ;;  %v480_v43 = vadd.f32 %v476_v44, %v416_v41 }
 0x101   : > { %v524_v13 = vmul.f32 %v1702_v57, %v1326_v2  ;;  %v527_v51 = vmul.f32 %v1703_v37, %v1324_v1  ;;  %v528_v25 = vmul.f32 %v1704_v7, %v1324_v1  ;;  %v325_v47 = vadd.f32 %v319_v9, %v313_v49 }
 0x102   : > { %v326_v2 = vadd.f32 %v319_v9, %v314_v8  ;;  %v331_v39 = vmul.f32 %v1313_v61, %v1356_v18  ;;  %v332_v31 = vmul.f32 %v1313_v61, %v1358_v58  ;;  %v543_v1 = vadd.f32 %v539_v29, %v479_v33 }
 0x103   : > { %v1470_v55 = vadd.f32 %v527_v51, %v523_v17  ;;  %v1472_v56 = vadd.f32 %v528_v25, %v524_v13  ;;  %v544_v57 = vadd.f32 %v540_v45, %v480_v43  ;;  %v413_v38 = vadd.f32 %v409_v53, %v325_v47 }
 0x104   : > { %v414_v35 = vadd.f32 %v410_v54, %v326_v2  ;;  %v343_v44 = vadd.f32 %v337_v34, %v331_v39  ;;  %v344_v49 = vadd.f32 %v337_v34, %v332_v31  ;;  %v1479_v8 = vstv %s1434_s17 }
 0x105   : > { %v1482_v9 = vstv %s1436_s13  ;;  %v537_v41 = vmul.f32 %v1297_v46, %v1470_v55  ;;  %v538_v17 = vmul.f32 %v1297_v46, %v1472_v56  ;;  %v477_v13 = vadd.f32 %v473_v19, %v413_v38  ;;  %v341_v38 = vpop.permute.xlu0 %340 }
 0x106   : > { %v478_v37 = vadd.f32 %v474_v20, %v414_v35  ;;  %v419_v29 = vmul.f32 %v1316_v62, %v1362_v40  ;;  %v420_v45 = vmul.f32 %v1316_v62, %v1364_v50  ;;  %v1493_v53 = vstv %s1450_s18 }
 0x107   : > { %v1496_v54 = vstv %s1452_s19  ;;  %v1500_v51 = vsub.f32 %v279_v23, %v543_v1  ;;  %v1504_v7 = vsub.f32 %v280_v24, %v544_v57  ;;  %v541_v46 = vadd.f32 %v537_v41, %v477_v13 }
 0x108   : > { %v542_v19 = vadd.f32 %v538_v17, %v478_v37  ;;  %v423_v20 = vadd.f32 %v419_v29, %v343_v44  ;;  %v424_v25 = vadd.f32 %v420_v45, %v344_v49  ;;  %v483_v33 = vmul.f32 %v1319_v63, %v1446_v59  ;;  %v355_v37 = vpop.permute.xlu1 %354 }
 0x109   : > { %v484_v43 = vmul.f32 %v1319_v63, %v1448_v60  ;;  %v1705_v47 = vunpack.c.l.bf16 %v1223_v10  ;;  %v1706_v23 = vunpack.c.h.bf16 %v1223_v10  ;;  %v547_v12 = vmul.f32 %v1322_v0, %v1470_v55 }
 0x10a   : > { %v548_v24 = vmul.f32 %v1322_v0, %v1472_v56  ;;  %v487_v39 = vadd.f32 %v483_v33, %v423_v20  ;;  %v333_v1 = vmul.f32 %v1313_v61, %v1402_v21  ;;  %v334_v57 = vmul.f32 %v1313_v61, %v1404_v11 }
 0x10b   : > { %v575_v2 = vsub.f32 %v1705_v47, %v541_v46  ;;  %v576_v34 = vsub.f32 %v1706_v23, %v542_v19  ;;  %v488_v31 = vadd.f32 %v484_v43, %v424_v25  ;;  %v421_v35 = vmul.f32 %v1316_v62, %v1406_v22 }
 0x10c   : > { %v422_v10 = vmul.f32 %v1316_v62, %v1408_v26  ;;  %v485_v44 = vmul.f32 %v1319_v63, %v1410_v27  ;;  %v486_v49 = vmul.f32 %v1319_v63, %v1412_v28  ;;  %v551_v41 = vadd.f32 %v547_v12, %v487_v39 }
 0x10d   : > { %v552_v17 = vadd.f32 %v548_v24, %v488_v31  ;;  %v549_v13 = vmul.f32 %v1322_v0, %v1414_v32  ;;  %v550_v61 = vmul.f32 %v1322_v0, %v1416_v15  ;;  %v345_v29 = vadd.f32 %v341_v38, %v333_v1 }
 0x10e   : > { %v346_v45 = vadd.f32 %v341_v38, %v334_v57  ;;  %v349_v62 = vmul.f32 %v1329_v3, %v1356_v18  ;;  %v350_v46 = vmul.f32 %v1329_v3, %v1358_v58  ;;  %v1707_v19 = vunpack.c.l.bf16 %v1280_v36 }
 0x10f   : > { %v588_v20 = vsub.f32 %v392_v52, %v552_v17  ;;  %v429_v25 = vmul.f32 %v1332_v4, %v1362_v40  ;;  %v430_v0 = vmul.f32 %v1332_v4, %v1364_v50  ;;  %v425_v33 = vadd.f32 %v421_v35, %v345_v29 }
 0x110   : > { %v587_v63 = vsub.f32 %v1707_v19, %v551_v41  ;;  %v426_v43 = vadd.f32 %v422_v10, %v346_v45  ;;  %v361_v47 = vadd.f32 %v355_v37, %v349_v62  ;;  %v362_v23 = vadd.f32 %v355_v37, %v350_v46 }
 0x111   : > { %v592_v24 = vmul.f32 %v588_v20, %v588_v20  ;;  %v493_v39 = vmul.f32 %v1335_v5, %v1446_v59  ;;  %v494_v31 = vmul.f32 %v1335_v5, %v1448_v60  ;;  %v489_v36 = vadd.f32 %v485_v44, %v425_v33 }
 0x112   : > { %v591_v12 = vmul.f32 %v587_v63, %v587_v63  ;;  %v490_v52 = vadd.f32 %v486_v49, %v426_v43  ;;  %v433_v1 = vadd.f32 %v429_v25, %v361_v47  ;;  %v434_v57 = vadd.f32 %v430_v0, %v362_v23 }
 0x113   : > { %v579_v38 = vmul.f32 %v575_v2, %v575_v2  ;;  %v580_v41 = vmul.f32 %v576_v34, %v576_v34  ;;  %v557_v35 = vmul.f32 %v1338_v6, %v1470_v55  ;;  %v558_v10 = vmul.f32 %v1338_v6, %v1472_v56 }
 0x114   : > { %v553_v17 = vadd.f32 %v549_v13, %v489_v36  ;;  %v554_v37 = vadd.f32 %v550_v61, %v490_v52  ;;  %v497_v29 = vadd.f32 %v493_v39, %v433_v1  ;;  %v498_v45 = vadd.f32 %v494_v31, %v434_v57  ;;  %v373_v13 = vpop.permute.xlu0 %372 }
 0x115   : > { %v595_v62 = vadd.f32 %v591_v12, %v579_v38  ;;  %v596_v46 = vadd.f32 %v592_v24, %v580_v41  ;;  %v367_v44 = vmul.f32 %v1479_v8, %v1356_v18  ;;  %v368_v49 = vmul.f32 %v1479_v8, %v1358_v58  ;;  %v359_v12 = vpop.permute.xlu1 %358 }
 0x116   : > { %v1708_v2 = vunpack.c.l.bf16 %v1233_v14  ;;  %v1709_v19 = vunpack.c.h.bf16 %v1233_v14  ;;  %v561_v20 = vadd.f32 %v557_v35, %v497_v29  ;;  %v562_v25 = vadd.f32 %v558_v10, %v498_v45 }
 0x117   : > { %v439_v61 = vmul.f32 %v1482_v9, %v1362_v40  ;;  %v440_v0 = vmul.f32 %v1482_v9, %v1364_v50  ;;  %v503_v18 = vmul.f32 %v1493_v53, %v1446_v59  ;;  %v504_v58 = vmul.f32 %v1493_v53, %v1448_v60 }
 0x118   : > { %v589_v34 = vsub.f32 %v1708_v2, %v553_v17  ;;  %v590_v63 = vsub.f32 %v1709_v19, %v554_v37  ;;  %v1710_v33 = vunpack.c.l.bf16 %v1291_v42  ;;  %v1711_v14 = vunpack.c.h.bf16 %v1291_v42 }
 0x119   : > { %v567_v23 = vmul.f32 %v1496_v54, %v1470_v55  ;;  %v568_v40 = vmul.f32 %v1496_v54, %v1472_v56  ;;  %v379_v50 = vadd.f32 %v373_v13, %v367_v44  ;;  %v380_v24 = vadd.f32 %v373_v13, %v368_v49  ;;  %v377_v44 = vpop.permute.xlu1 %376 }
 0x11a   : > { %v599_v43 = vsub.f32 %v1710_v33, %v561_v20  ;;  %v600_v47 = vsub.f32 %v1711_v14, %v562_v25  ;;  %v351_v59 = vmul.f32 %v1329_v3, %v1402_v21  ;;  %v352_v60 = vmul.f32 %v1329_v3, %v1404_v11  ;;  %v624_v14 = vld [vmem:[#allocation9 + $0x8] sm:$0xff] }
 0x11b   : > { %v593_v39 = vmul.f32 %v589_v34, %v589_v34  ;;  %v594_v31 = vmul.f32 %v590_v63, %v590_v63  ;;  %v443_v52 = vadd.f32 %v439_v61, %v379_v50  ;;  %v444_v1 = vadd.f32 %v440_v0, %v380_v24 }
 0x11c   : > { %v603_v36 = vmul.f32 %v599_v43, %v599_v43  ;;  %v604_v42 = vmul.f32 %v600_v47, %v600_v47  ;;  %v363_v57 = vadd.f32 %v359_v12, %v351_v59  ;;  %v364_v55 = vadd.f32 %v359_v12, %v352_v60 }
 0x11d   : > { %v431_v56 = vmul.f32 %v1332_v4, %v1406_v22  ;;  %v432_v35 = vmul.f32 %v1332_v4, %v1408_v26  ;;  %v507_v10 = vadd.f32 %v503_v18, %v443_v52  ;;  %v508_v17 = vadd.f32 %v504_v58, %v444_v1 }
 0x11e   : > { %v607_v38 = vadd.f32 %v603_v36, %v595_v62  ;;  %v608_v41 = vadd.f32 %v604_v42, %v596_v46  ;;  %v495_v3 = vmul.f32 %v1335_v5, %v1410_v27  ;;  %v496_v37 = vmul.f32 %v1335_v5, %v1412_v28 }
 0x11f   : > { %v435_v29 = vadd.f32 %v431_v56, %v363_v57  ;;  %v436_v45 = vadd.f32 %v432_v35, %v364_v55  ;;  %v559_v62 = vmul.f32 %v1338_v6, %v1414_v32  ;;  %v560_v46 = vmul.f32 %v1338_v6, %v1416_v15 }
 0x120   : > { %v571_v49 = vadd.f32 %v567_v23, %v507_v10  ;;  %v572_v2 = vadd.f32 %v568_v40, %v508_v17  ;;  %v369_v4 = vmul.f32 %v1479_v8, %v1402_v21  ;;  %v370_v34 = vmul.f32 %v1479_v8, %v1404_v11  ;;  %v625_v10 = vld [vmem:[#allocation9 + $0x10] sm:$0xff]  ;;  %v626_v17 = vld [vmem:[#allocation9 + $0x18] sm:$0xff] }
 0x121   : > { %v499_v19 = vadd.f32 %v495_v3, %v435_v29  ;;  %v500_v63 = vadd.f32 %v496_v37, %v436_v45  ;;  %v441_v5 = vmul.f32 %v1482_v9, %v1406_v22  ;;  %v442_v20 = vmul.f32 %v1482_v9, %v1408_v26  ;;  %v623_v9 = vld [vmem:[#allocation9] sm:$0xff] }
 0x122   : > { %v1712_v25 = vunpack.c.l.bf16 %v1302_v48  ;;  %v1713_v13 = vunpack.c.h.bf16 %v1302_v48  ;;  %v381_v0 = vadd.f32 %v377_v44, %v369_v4  ;;  %v382_v18 = vadd.f32 %v377_v44, %v370_v34 }
 0x123   : > { %v563_v21 = vadd.f32 %v559_v62, %v499_v19  ;;  %v564_v58 = vadd.f32 %v560_v46, %v500_v63  ;;  %v505_v11 = vmul.f32 %v1493_v53, %v1410_v27  ;;  %v506_v8 = vmul.f32 %v1493_v53, %v1412_v28 }
 0x124   : > { %v611_v6 = vsub.f32 %v1712_v25, %v571_v49  ;;  %v612_v61 = vsub.f32 %v1713_v13, %v572_v2  ;;  %v445_v43 = vadd.f32 %v441_v5, %v381_v0  ;;  %v446_v26 = vadd.f32 %v442_v20, %v382_v18 }
 0x125   : > { %v1714_v47 = vunpack.c.l.bf16 %v1242_v16  ;;  %v1715_v23 = vunpack.c.h.bf16 %v1242_v16  ;;  %v569_v12 = vmul.f32 %v1496_v54, %v1414_v32  ;;  %v570_v27 = vmul.f32 %v1496_v54, %v1416_v15 }
 0x126   : > { %v615_v22 = vmul.f32 %v611_v6, %v611_v6  ;;  %v616_v33 = vmul.f32 %v612_v61, %v612_v61  ;;  %v509_v53 = vadd.f32 %v505_v11, %v445_v43  ;;  %v510_v24 = vadd.f32 %v506_v8, %v446_v26 }
 0x127   : > { %v601_v48 = vsub.f32 %v1714_v47, %v563_v21  ;;  %v602_v40 = vsub.f32 %v1715_v23, %v564_v58  ;;  %v581_v59 = vmul.f32 %v1500_v51, %v1500_v51  ;;  %v582_v60 = vmul.f32 %v1504_v7, %v1504_v7 }
 0x128   : > { %v619_v50 = vadd.f32 %v615_v22, %v607_v38  ;;  %v620_v28 = vadd.f32 %v616_v33, %v608_v41  ;;  %v573_v1 = vadd.f32 %v569_v12, %v509_v53  ;;  %v574_v57 = vadd.f32 %v570_v27, %v510_v24 }
 0x129   : > { %v605_v36 = vmul.f32 %v601_v48, %v601_v48  ;;  %v606_v42 = vmul.f32 %v602_v40, %v602_v40  ;;  %v597_v32 = vadd.f32 %v593_v39, %v581_v59  ;;  %v598_v55 = vadd.f32 %v594_v31, %v582_v60 }
 0x12a   : > { %v627_v16 = vadd.f32 %v623_v9, %v619_v50  ;;  %v628_v52 = vadd.f32 %v624_v14, %v620_v28  ;;  %v1716_v15 = vunpack.c.l.bf16 %v1267_v30  ;;  %v1717_v38 = vunpack.c.h.bf16 %v1267_v30 }
 0x12b   : > { %v609_v41 = vadd.f32 %v605_v36, %v597_v32  ;;  %v610_v56 = vadd.f32 %v606_v42, %v598_v55 }
 0x12c   : > { %631 = vst [vmem:[#allocation9] sm:$0xff] %v627_v16  ;;  %632 = vst [vmem:[#allocation9 + $0x8] sm:$0xff] %v628_v52  ;;  %v613_v54 = vsub.f32 %v1716_v15, %v573_v1  ;;  %v614_v51 = vsub.f32 %v1717_v38, %v574_v57 }
 0x12e   : > { %v617_v7 = vmul.f32 %v613_v54, %v613_v54  ;;  %v618_v35 = vmul.f32 %v614_v51, %v614_v51 }
 0x130   : > { %v621_v3 = vadd.f32 %v617_v7, %v609_v41  ;;  %v622_v39 = vadd.f32 %v618_v35, %v610_v56 }
 0x132   : > { %v629_v31 = vadd.f32 %v625_v10, %v621_v3  ;;  %v630_v37 = vadd.f32 %v626_v17, %v622_v39 }
 0x134   : > { %633 = vst [vmem:[#allocation9 + $0x10] sm:$0xff] %v629_v31  ;;  %634 = vst [vmem:[#allocation9 + $0x18] sm:$0xff] %v630_v37 }
 0x135   : > { %944 = shalt.err (!%p941_p4)
}
 0x136   : > { %s945_s16 = scalar_lea.hbm %s1676_s4, 512 }
 0x137   : > { %p946_p7 = scmp.ne.s32.totalorder %s1676_s4, %s945_s16  ;;  %p951_p5 = scmp.lt.u32.totalorder %s945_s16, %s1676_s4 }
 0x139   : > { %p947_p8 = pnand %p946_p7, %p1628_p6 }
 0x13b   : > { %p948_p3 = pneg %p947_p8 }
 0x13d   : > { %p953_p11 = pnand %p951_p5, %p948_p3 }
 0x13f   : > { %956 = shalt.err (!%p953_p11)
}
 0x140   : > { %s1032_s5 = smov 256   ;;  %s1033_s7 = smov 16  }
 0x141   : > { %774 = dma.vmem_to_hbm [thread:$0]  (%p1628_p6), %s645_s28, 512, %s1676_s4, [#allocation6], %s1032_s5, %s1032_s5, %s1033_s7  }
 0x142   : > { %992 = dma.done.wait (%p1628_p6), [#allocation6], 512  }
 0x143   : > { %994 = vsyncadd (%p1628_p6), [#allocation6], 4294966784 }
 0x144 PF: > { %s25_s24 = sadd.s32 1, %s1017_s24   ;;  %s1719_s20 = smov %s1001_s0 }
 0x145   : > { %p22_p12 = scmp.ge.s32.totalorder %s25_s24, 4   ;;  %s1720_s0 = smov %s1005_s21 }
 0x146   : > { %s1721_s21 = smov %s1150_s8  ;;  %s1722_s22 = smov %s1013_s23 }
 0x147   : > { %s1723_s23 = smov %s1725_s6  ;;  %24 = sbr.rel (!%p22_p12) target bundleno = 21 (0x15), region = 83 }
 0x14e   :  { %660 = vsyncpa [#allocation5], 1 }
 0x14f   :  { %662 = vsyncpa [#allocation5 + $0x1], 1 }
 0x150   :  { %663 = vsyncpa [#allocation8], 1 }
 0x151   :  { %665 = vsyncpa [#allocation8 + $0x1], 1 }
 0x152   :  { %666 = vsyncpa [#allocation6], 1 }
 0x153   :  { %668 = vsyncpa [#allocation6 + $0x1], 1 }

</bundles_post_ra>
